<compile_context>
chip_gen: v6e
topology: v6e:2x2x1
jax: 0.10.0
libtpu: 0.0.40
codegen_flags: <defaults>
</compile_context>

<pallas_src>
import functools
import math

import jax
import jax.numpy as jnp
from jax.experimental import pallas as pl
from jax.experimental.pallas import tpu as pltpu


_F32_EPS = float(jnp.finfo(jnp.float32).eps)
_F32_MAX = float(jnp.finfo(jnp.float32).max)


def _round_up(x, m):
    return (x + m - 1) // m * m


def _row_stats(logits, wL, wH, bb, num_class):
    """Per-row statistics shared by both kernels: (rowmax, logits-rowmax, 1/T)."""
    inv_log_c = 1.0 / math.log(num_class)

    # LTS = logits @ w_L  (VPU multiply + lane reduce; MXU not worth it here).
    lts = jnp.sum(logits * wL, axis=-1, keepdims=True)            # (TN, 1)

    # Softmax pieces; negative entropy without a (TN, C) log pass:
    #   H_hat = sum_j p_j log p_j = sum_j e_j (x_j - m) / s - log s
    m = jnp.max(logits, axis=-1, keepdims=True)                   # (TN, 1)
    xs = logits - m                                               # (TN, C)
    e = jnp.exp(xs)
    s = jnp.sum(e, axis=-1, keepdims=True)
    sxe = jnp.sum(e * xs, axis=-1, keepdims=True)
    h_hat = sxe / s - jnp.log(s)                                  # (TN, 1), NaN-free

    a = lts + wH * (h_hat * inv_log_c) + bb                       # (TN, 1)

    # Numerically stable softplus, clamped exactly like the reference.
    t = jnp.where(a > 20.0, a, jnp.log1p(jnp.exp(jnp.minimum(a, 20.0))))
    t = jnp.clip(t, _F32_EPS, _F32_MAX)
    return m, xs, 1.0 / t


def _adats_eval_kernel(logits_ref, wL_ref, params_ref, conf_ref, pred_ref, *,
                       num_class):
    logits = logits_ref[...]                                      # (TN, C) f32
    wL = wL_ref[...]                                              # (1, C)
    wH = params_ref[0:1, 0:1]                                     # (1, 1)
    bb = params_ref[0:1, 1:2]                                     # (1, 1)
    m, xs, inv_t = _row_stats(logits, wL, wH, bb, num_class)
    del m

    # conf = max_j softmax(logits/T)_j = 1 / sum_j exp((logits_j - rowmax)/T)
    # (the argmax term is exp(0) = 1), computed straight from xs so there is no
    # large-magnitude cancellation on scaled logits.
    e2 = jnp.exp(xs * inv_t)                                      # (TN, C)
    s2 = jnp.sum(e2, axis=-1, keepdims=True)                      # (TN, 1)
    conf_ref[...] = 1.0 / s2

    # pred = argmax(logits/T) = argmax(logits): first lane where xs == 0 (exact).
    lane = jax.lax.broadcasted_iota(jnp.int32, logits.shape, 1)
    pred_ref[...] = jnp.min(jnp.where(xs == 0.0, lane, num_class),
                            axis=-1, keepdims=True).astype(jnp.int32)


def _adats_train_kernel(logits_ref, wL_ref, params_ref, labels_ref, nll_ref, *,
                        num_class):
    logits = logits_ref[...]                                      # (TN, C) f32
    wL = wL_ref[...]                                              # (1, C)
    wH = params_ref[0:1, 0:1]
    bb = params_ref[0:1, 1:2]
    m, xs, inv_t = _row_stats(logits, wL, wH, bb, num_class)

    # Per-row cross-entropy on the temperature-scaled logits without ever
    # materializing (N, C) scaled logits in HBM:
    #   lse_i = max(scaled_i) + log(sum_j exp(scaled_ij - max)) = m*inv_T + log(s2)
    #   nll_i = lse_i - scaled_i[label_i]
    e2 = jnp.exp(xs * inv_t)
    s2 = jnp.sum(e2, axis=-1, keepdims=True)
    lse = m * inv_t + jnp.log(s2)                                 # (TN, 1)

    lane = jax.lax.broadcasted_iota(jnp.int32, logits.shape, 1)
    lab = labels_ref[...]                                         # (TN, 1) i32
    picked = jnp.sum(jnp.where(lane == lab, logits, 0.0),
                     axis=-1, keepdims=True)                      # logits[i, label_i]
    nll_ref[...] = lse - picked * inv_t


def _pick_row_tile(n, c, *, target_io_bytes=2 << 20, vmem_budget_bytes=12 << 20):
    # Per grid step: ~2 double-buffered (row_tile, C) f32 input tiles plus
    # ~4 in-kernel f32 temporaries of the same shape -> ~24*row_tile*C bytes.
    cap = max(8, vmem_budget_bytes // (24 * c))
    want = max(8, target_io_bytes // (4 * c))     # aim for ~2 MiB of logits/step
    tile = min(cap, want, _round_up(n, 8))
    return max(8, (tile // 8) * 8)


def _prep_operands(logits, w_L, w_H, b, row_tile):
    n, c = logits.shape
    logits = logits.astype(jnp.float32)
    n_pad = _round_up(n, row_tile)
    if n_pad != n:
        logits = jnp.pad(logits, ((0, n_pad - n), (0, 0)))
    wl_row = jnp.reshape(w_L, (1, c)).astype(jnp.float32)
    params = jnp.concatenate([jnp.reshape(w_H, (1,)), jnp.reshape(b, (1,))]
                             ).reshape(1, 2).astype(jnp.float32)
    return logits, wl_row, params, n_pad


def adats_eval_confidences(logits, w_L, w_H, b, *, row_tile=None):
    """Pallas eval path: per-row calibrated confidence and prediction (unsorted)."""
    n, c = logits.shape
    if row_tile is None:
        row_tile = _pick_row_tile(n, c)
    logits_p, wl_row, params, n_pad = _prep_operands(logits, w_L, w_H, b, row_tile)

    conf, pred = pl.pallas_call(
        functools.partial(_adats_eval_kernel, num_class=c),
        out_shape=(jax.ShapeDtypeStruct((n_pad, 1), jnp.float32),
                   jax.ShapeDtypeStruct((n_pad, 1), jnp.int32)),
        grid=(n_pad // row_tile,),
        in_specs=[pl.BlockSpec((row_tile, c), lambda i: (i, 0)),
                  pl.BlockSpec((1, c), lambda i: (0, 0)),
                  pl.BlockSpec((1, 2), lambda i: (0, 0))],
        out_specs=(pl.BlockSpec((row_tile, 1), lambda i: (i, 0)),
                   pl.BlockSpec((row_tile, 1), lambda i: (i, 0))),
        compiler_params=pltpu.CompilerParams(dimension_semantics=("parallel",)),
    )(logits_p, wl_row, params)
    return conf[:n, 0], pred[:n, 0]


def adats_train_loss(logits, labels, w_L, w_H, b, *, row_tile=None):
    """Pallas training path: mean cross-entropy on temperature-scaled logits."""
    n, c = logits.shape
    if row_tile is None:
        row_tile = _pick_row_tile(n, c)
    logits_p, wl_row, params, n_pad = _prep_operands(logits, w_L, w_H, b, row_tile)
    labels_col = jnp.pad(labels.astype(jnp.int32), (0, n_pad - n)).reshape(n_pad, 1)

    nll = pl.pallas_call(
        functools.partial(_adats_train_kernel, num_class=c),
        out_shape=jax.ShapeDtypeStruct((n_pad, 1), jnp.float32),
        grid=(n_pad // row_tile,),
        in_specs=[pl.BlockSpec((row_tile, c), lambda i: (i, 0)),
                  pl.BlockSpec((1, c), lambda i: (0, 0)),
                  pl.BlockSpec((1, 2), lambda i: (0, 0)),
                  pl.BlockSpec((row_tile, 1), lambda i: (i, 0))],
        out_specs=pl.BlockSpec((row_tile, 1), lambda i: (i, 0)),
        compiler_params=pltpu.CompilerParams(dimension_semantics=("parallel",)),
    )(logits_p, wl_row, params, labels_col)
    return jnp.mean(nll[:n, 0])


def adaptive_temperature_scale(logits, labels, w_L, w_H, b, *, training=False):
    """JAX/Pallas equivalent of Adaptive_temperature_scale.forward."""
    if training:
        return adats_train_loss(logits, labels, w_L, w_H, b)
    conf, pred = adats_eval_confidences(logits, w_L, w_H, b)
    hits = pred == labels
    # TODO(synk): torch.sort of the confidences (and the .cpu()/.numpy()
    # conversion) has no clean Pallas equivalent; done in JAX glue.
    order = jnp.argsort(conf)
    return conf[order], hits[order], True


# ----------------------------- pure-JAX references -----------------------------

def _reference_eval(logits, w_L, w_H, b):
    c = logits.shape[1]
    lts = logits @ w_L
    p = jax.nn.softmax(logits, axis=1)
    h_hat = jnp.sum(p * jnp.log(p), axis=1)
    a = lts + w_H[0] * (h_hat / math.log(c)) + b[0]
    t = jnp.clip(jnp.log1p(jnp.exp(a)), _F32_EPS, _F32_MAX)
    scaled = logits / t[:, None]
    prob = jax.nn.softmax(scaled, axis=1)
    return jnp.max(prob, axis=1), jnp.argmax(prob, axis=1)


def _reference_train_loss(logits, labels, w_L, w_H, b):
    c = logits.shape[1]
    lts = logits @ w_L
    p = jax.nn.softmax(logits, axis=1)
    h_hat = jnp.sum(p * jnp.log(p), axis=1)
    a = lts + w_H[0] * (h_hat / math.log(c)) + b[0]
    t = jnp.clip(jnp.log1p(jnp.exp(a)), _F32_EPS, _F32_MAX)
    scaled = logits / t[:, None]
    logp = jax.nn.log_softmax(scaled, axis=1)
    return -jnp.mean(jnp.take_along_axis(logp, labels[:, None], axis=1))


if __name__ == "__main__":
    NUM_CLASS = 8   # cfg.MODEL.NUM_CLASS
    N = 16          # batch of "simple vectors" (logits)

    key = jax.random.PRNGKey(0)
    k1, k2 = jax.random.split(key)
    logits = jax.random.normal(k1, (N, NUM_CLASS), dtype=jnp.float32) * 3.0
    labels = jax.random.randint(k2, (N,), 0, NUM_CLASS, dtype=jnp.int32)

    # Deterministic parameter init, exactly as the module's __init__:
    w_L = jnp.ones((NUM_CLASS,), dtype=jnp.float32)
    w_H = jnp.array([1.0], dtype=jnp.float32)
    b = jnp.array([1.0], dtype=jnp.float32)

    # --- eval branch: raw (unsorted) conf/pred against the pure-JAX reference ---
    conf, pred = adats_eval_confidences(logits, w_L, w_H, b)
    conf = jax.block_until_ready(conf)
    pred = jax.block_until_ready(pred)
    conf_ref, pred_ref = _reference_eval(logits, w_L, w_H, b)
    assert jnp.allclose(conf, conf_ref, atol=5e-5, rtol=5e-5)
    assert bool(jnp.all(pred == pred_ref))

    # Module-style return (sorted by confidence) also runs end to end.
    conf_s, hits_s, flag = adaptive_temperature_scale(
        logits, labels, w_L, w_H, b, training=False)
    conf_s = jax.block_until_ready(conf_s)
    hits_s = jax.block_until_ready(hits_s)
    assert flag is True
    assert conf_s.shape == (N,) and hits_s.shape == (N,)
    assert bool(jnp.all(conf_s[:-1] <= conf_s[1:]))

    # --- training branch: CE loss on temperature-scaled logits ---
    loss = jax.block_until_ready(
        adaptive_temperature_scale(logits, labels, w_L, w_H, b, training=True))
    loss_ref = _reference_train_loss(logits, labels, w_L, w_H, b)
    assert bool(jnp.isfinite(loss))
    assert jnp.allclose(loss, loss_ref, rtol=1e-3, atol=1e-2)

    print("KERNEL_OK")
</pallas_src>

<mosaic_0001>
module attributes {stable_mosaic.version = 11 : i64} {
  func.func @_adats_eval_kernel(%arg0: i32, %arg1: memref<16x8xf32, #tpu.memory_space<vmem>>, %arg2: memref<1x8xf32, #tpu.memory_space<vmem>>, %arg3: memref<1x2xf32, #tpu.memory_space<vmem>>, %arg4: memref<16x1xf32, #tpu.memory_space<vmem>>, %arg5: memref<16x1xi32, #tpu.memory_space<vmem>>) attributes {dimension_semantics = [#tpu.dimension_semantics<parallel>], iteration_bounds = array<i64: 1>, scalar_prefetch = 0 : i64, scratch_operands = 0 : i64, tpu.core_type = #tpu.core_type<tc>, window_params = [{transform_indices = @transform_0, window_bounds = array<i64: 16, 8>}, {pipeline_mode = #tpu.pipeline_mode<synchronous>, transform_indices = @transform_1, window_bounds = array<i64: 1, 8>}, {pipeline_mode = #tpu.pipeline_mode<synchronous>, transform_indices = @transform_2, window_bounds = array<i64: 1, 2>}, {transform_indices = @transform_3, window_bounds = array<i64: 16, 1>}, {transform_indices = @transform_4, window_bounds = array<i64: 16, 1>}]} {
    %c0 = arith.constant 0 : index
    %c0_0 = arith.constant 0 : index
    %0 = vector.load %arg1[%c0, %c0_0] : memref<16x8xf32, #tpu.memory_space<vmem>>, vector<16x8xf32>
    %c0_1 = arith.constant 0 : index
    %c0_2 = arith.constant 0 : index
    %1 = vector.load %arg2[%c0_1, %c0_2] : memref<1x8xf32, #tpu.memory_space<vmem>>, vector<1x8xf32>
    %c0_3 = arith.constant 0 : index
    %c0_4 = arith.constant 0 : index
    %2 = vector.load %arg3[%c0_3, %c0_4] : memref<1x2xf32, #tpu.memory_space<vmem>>, vector<1x1xf32>
    %c0_5 = arith.constant 0 : index
    %c1 = arith.constant 1 : index
    %3 = vector.load %arg3[%c0_5, %c1] : memref<1x2xf32, #tpu.memory_space<vmem>>, vector<1x1xf32>
    %4 = vector.broadcast %1 : vector<1x8xf32> to vector<16x8xf32>
    %5 = arith.mulf %0, %4 : vector<16x8xf32>
    %cst = arith.constant dense<0.000000e+00> : vector<16xf32>
    %6 = vector.multi_reduction <add>, %5, %cst [1] : vector<16x8xf32> to vector<16xf32>
    %7 = vector.shape_cast %6 : vector<16xf32> to vector<16x1xf32>
    %cst_6 = arith.constant dense<0xFF800000> : vector<16xf32>
    %8 = vector.multi_reduction <maximumf>, %0, %cst_6 [1] : vector<16x8xf32> to vector<16xf32>
    %9 = vector.shape_cast %8 : vector<16xf32> to vector<16x1xf32>
    %10 = vector.broadcast %9 : vector<16x1xf32> to vector<16x8xf32>
    %11 = arith.subf %0, %10 : vector<16x8xf32>
    %12 = math.exp %11 : vector<16x8xf32>
    %cst_7 = arith.constant dense<0.000000e+00> : vector<16xf32>
    %13 = vector.multi_reduction <add>, %12, %cst_7 [1] : vector<16x8xf32> to vector<16xf32>
    %14 = vector.shape_cast %13 : vector<16xf32> to vector<16x1xf32>
    %15 = arith.mulf %12, %11 : vector<16x8xf32>
    %cst_8 = arith.constant dense<0.000000e+00> : vector<16xf32>
    %16 = vector.multi_reduction <add>, %15, %cst_8 [1] : vector<16x8xf32> to vector<16xf32>
    %17 = vector.shape_cast %16 : vector<16xf32> to vector<16x1xf32>
    %18 = arith.divf %17, %14 : vector<16x1xf32>
    %19 = math.log %14 : vector<16x1xf32>
    %20 = arith.subf %18, %19 : vector<16x1xf32>
    %cst_9 = arith.constant 0.48089835 : f32
    %21 = vector.broadcast %cst_9 : f32 to vector<16x1xf32>
    %22 = arith.mulf %20, %21 : vector<16x1xf32>
    %23 = vector.broadcast %2 : vector<1x1xf32> to vector<16x1xf32>
    %24 = arith.mulf %23, %22 : vector<16x1xf32>
    %25 = arith.addf %7, %24 : vector<16x1xf32>
    %26 = vector.broadcast %3 : vector<1x1xf32> to vector<16x1xf32>
    %27 = arith.addf %25, %26 : vector<16x1xf32>
    %cst_10 = arith.constant 2.000000e+01 : f32
    %28 = vector.broadcast %cst_10 : f32 to vector<16x1xf32>
    %29 = arith.cmpf ogt, %27, %28 : vector<16x1xf32>
    %cst_11 = arith.constant 2.000000e+01 : f32
    %30 = vector.broadcast %cst_11 : f32 to vector<16x1xf32>
    %31 = arith.minimumf %27, %30 : vector<16x1xf32>
    %32 = math.exp %31 : vector<16x1xf32>
    %33 = math.log1p %32 : vector<16x1xf32>
    %34 = arith.select %29, %27, %33 : vector<16x1xi1>, vector<16x1xf32>
    %cst_12 = arith.constant 1.1920929E-7 : f32
    %cst_13 = arith.constant 3.40282347E+38 : f32
    %35 = vector.broadcast %cst_12 : f32 to vector<16x1xf32>
    %36 = arith.maximumf %35, %34 : vector<16x1xf32>
    %37 = vector.broadcast %cst_13 : f32 to vector<16x1xf32>
    %38 = arith.minimumf %37, %36 : vector<16x1xf32>
    %cst_14 = arith.constant 1.000000e+00 : f32
    %39 = vector.broadcast %cst_14 : f32 to vector<16x1xf32>
    %40 = arith.divf %39, %38 : vector<16x1xf32>
    %41 = vector.broadcast %40 : vector<16x1xf32> to vector<16x8xf32>
    %42 = arith.mulf %11, %41 : vector<16x8xf32>
    %43 = math.exp %42 : vector<16x8xf32>
    %cst_15 = arith.constant dense<0.000000e+00> : vector<16xf32>
    %44 = vector.multi_reduction <add>, %43, %cst_15 [1] : vector<16x8xf32> to vector<16xf32>
    %45 = vector.shape_cast %44 : vector<16xf32> to vector<16x1xf32>
    %cst_16 = arith.constant 1.000000e+00 : f32
    %46 = vector.broadcast %cst_16 : f32 to vector<16x1xf32>
    %47 = arith.divf %46, %45 : vector<16x1xf32>
    %c0_17 = arith.constant 0 : index
    %c0_18 = arith.constant 0 : index
    %48 = vector.load %arg4[%c0_17, %c0_18] : memref<16x1xf32, #tpu.memory_space<vmem>>, vector<16x1xf32>
    tpu.vector_store %arg4[%c0_17, %c0_18], %47 {strides = array<i32>} : memref<16x1xf32, #tpu.memory_space<vmem>>, vector<16x1xf32>,
    %49 = tpu.iota {dimensions = array<i32: 1>} : vector<16x8xi32>
    %cst_19 = arith.constant 0.000000e+00 : f32
    %50 = vector.broadcast %cst_19 : f32 to vector<16x8xf32>
    %51 = arith.cmpf oeq, %11, %50 : vector<16x8xf32>
    %c8_i32 = arith.constant 8 : i32
    %52 = vector.broadcast %c8_i32 : i32 to vector<16x8xi32>
    %53 = arith.select %51, %49, %52 : vector<16x8xi1>, vector<16x8xi32>
    %cst_20 = arith.constant dense<2147483647> : vector<16xi32>
    %54 = vector.multi_reduction <minsi>, %53, %cst_20 [1] : vector<16x8xi32> to vector<16xi32>
    %55 = vector.shape_cast %54 : vector<16xi32> to vector<16x1xi32>
    %c0_21 = arith.constant 0 : index
    %c0_22 = arith.constant 0 : index
    %56 = vector.load %arg5[%c0_21, %c0_22] : memref<16x1xi32, #tpu.memory_space<vmem>>, vector<16x1xi32>
    tpu.vector_store %arg5[%c0_21, %c0_22], %55 {strides = array<i32>} : memref<16x1xi32, #tpu.memory_space<vmem>>, vector<16x1xi32>,
    return
  }
  func.func @transform_0(%arg0: i32) -> (i32, i32) {
    %c0_i32 = arith.constant 0 : i32
    %c0_i32_0 = arith.constant 0 : i32
    return %arg0, %c0_i32 : i32, i32
  }
  func.func @transform_1(%arg0: i32) -> (i32, i32) {
    %c0_i32 = arith.constant 0 : i32
    %c0_i32_0 = arith.constant 0 : i32
    %c0_i32_1 = arith.constant 0 : i32
    return %c0_i32, %c0_i32_0 : i32, i32
  }
  func.func @transform_2(%arg0: i32) -> (i32, i32) {
    %c0_i32 = arith.constant 0 : i32
    %c0_i32_0 = arith.constant 0 : i32
    %c0_i32_1 = arith.constant 0 : i32
    return %c0_i32, %c0_i32_0 : i32, i32
  }
  func.func @transform_3(%arg0: i32) -> (i32, i32) {
    %c0_i32 = arith.constant 0 : i32
    %c0_i32_0 = arith.constant 0 : i32
    return %arg0, %c0_i32 : i32, i32
  }
  func.func @transform_4(%arg0: i32) -> (i32, i32) {
    %c0_i32 = arith.constant 0 : i32
    %c0_i32_0 = arith.constant 0 : i32
    return %arg0, %c0_i32 : i32, i32
  }
}

</mosaic_0001>

<bundles_post_ra>
// kernel: tpu_custom_call.1
= control target key start
LH: loop header
LB: loop body
LE: loop exit
PB: predicated region body
PF: predicated region fallthrough
CT: control target
= control target key end

     0   :  { %vm28_vm0 = vcmask 64512   ;;  %s237_s21 = smov 127   ;;  %v153_v24 = vlaneseq  ;;  %v238_v30 = vmov 0   ;;  %vm150_vm9 = vcmask 7168   ;;  %s324_s0 = inlined_call_operand.vmem [shape: f32[16,8], index: 0, kind: input, shape index: {}]   ;;  %s325_s1 = inlined_call_operand.vmem [shape: f32[1,8], index: 1, kind: input, shape index: {}]   ;;  %s326_s2 = inlined_call_operand.vmem [shape: f32[1,2], index: 2, kind: input, shape index: {}]   ;;  %s327_s4 = inlined_call_operand.vmem [shape: s32[16,1], index: 4, kind: output, shape index: {1}]   ;;  %s328_s3 = inlined_call_operand.vmem [shape: f32[16,1], index: 3, kind: output, shape index: {0}]  }
   0x1   :  { %v16_v0 = vld [vmem:[%s324_s0] sm:$0xff]  ;;  %v17_v1 = vld [vmem:[%s324_s0 + $0x8] sm:$0xff]  ;;  %203 = vset.pattern.permute.xlu1 %v238_v30  ;;  %204 = vset.pattern.permute.xlu0 %v238_v30 }
   0x2   :  { %v35_v2 = vsel %vm28_vm0, %v16_v0, -inf  ;;  %v38_v3 = vsel %vm28_vm0, %v17_v1, -inf  ;;  %v199_v10 = vld [vmem:[%s325_s1] ss:$0 sm:$0xff]  ;;  %v293_v25 = vand.u32 127, %v153_v24 }
   0x3   :  { %36 = vmax.xlane.f32.xlu0 %v35_v2  ;;  %v26_v14 = vmul.f32 %v199_v10, %v16_v0  ;;  %v27_v20 = vmul.f32 %v199_v10, %v17_v1  ;;  %v200_v23 = vld [vmem:[%s326_s2] ss:$0 sm:$0xff] }
   0x5   :  { %v29_v18 = vsel %vm28_vm0, %v26_v14, 0.0  ;;  %v32_v22 = vsel %vm28_vm0, %v27_v20, 0.0 }
   0x7   :  { %39 = vmax.xlane.f32.xlu0 %v38_v3 }
  0x8c   :  { %v37_v4 = vpop.xlane.xlu0 %36 }
  0x8d   :  { %v272_v5 = vsub.f32 %v16_v0, %v37_v4 }
  0x8f   :  { %v43_v6 = vmul.f32 1.442695, %v272_v5  ;;  %vm155_vm6 = vcmp.eq.f32.partialorder %v272_v5, 0.0 }
  0x90   :  { %v40_v7 = vpop.xlane.xlu0 %39  ;;  %v157_v24 = vsel %vm155_vm6, %v293_v25, 8 }
  0x91   :  { %205 = vpow2.f32 %v43_v6  ;;  %v275_v8 = vsub.f32 %v17_v1, %v40_v7 }
  0x93   :  { %v45_v9 = vmul.f32 1.442695, %v275_v8  ;;  %vm156_vm1 = vcmp.eq.f32.partialorder %v275_v8, 0.0 }
  0x94   :  { %v158_v26 = vsel %vm156_vm1, %v293_v25, 8 }
  0x95   :  { %207 = vpow2.f32 %v45_v9  ;;  %v297_v27 = vsel %vm28_vm0, %v158_v26, 2147483647  ;;  %v159_v26 = vsel %vm28_vm0, %v157_v24, 2147483647 }
  0x96   :  { %v176_v28 = vshra.s32 %v297_v27, 16 }
  0x98   :  { %v300_v29 = vcvt.s32.f32 %v176_v28  ;;  %v161_v28 = vshra.s32 %v159_v26, 16 }
  0x9a   :  { %v163_v30 = vcvt.s32.f32 %v161_v28 }
  0x9e   :  { %v206_v11 = vpop.eup %205 }
  0x9f   :  { %v47_v12 = vsel %vm28_vm0, %v206_v11, 0.0  ;;  %v53_v13 = vmul.f32 %v206_v11, %v272_v5 }
  0xa0   :  { %48 = vadd.xlane.f32.xlu1 %v47_v12 }
  0xa1   :  { %v55_v15 = vsel %vm28_vm0, %v53_v13, 0.0 }
  0xa2   :  { %v208_v16 = vpop.eup %207  ;;  %56 = vadd.xlane.f32.xlu0 %v55_v15 }
  0xa3   :  { %v50_v17 = vsel %vm28_vm0, %v208_v16, 0.0  ;;  %v54_v19 = vmul.f32 %v208_v16, %v275_v8 }
  0xa4   :  { %51 = vadd.xlane.f32.xlu1 %v50_v17 }
  0xa5   :  { %v58_v21 = vsel %vm28_vm0, %v54_v19, 0.0 }
  0xa6   :  { %30 = vadd.xlane.f32.xlu0 %v29_v18 }
  0xa8   :  { %59 = vadd.xlane.f32.xlu1 %v58_v21 }
  0xac   :  { %33 = vadd.xlane.f32.xlu1 %v32_v22 }
  0xbc   :  { %83 = vrot.lane.b32.xlu0 %v200_v23, %s237_s21 }
  0xdb   :  { %179 = vmin.xlane.f32.xlu0 %v300_v29 }
 0x129   :  { %v49_v31 = vpop.xlane.xlu1 %48 }
 0x12a   :  { %209 = vrcp.f32 %v49_v31 }
 0x12b   :  { %211 = vlog2.f32 %v49_v31  ;;  %v57_v33 = vpop.xlane.xlu0 %56 }
 0x12d   :  { %v52_v32 = vpop.xlane.xlu1 %51 }
 0x12e   :  { %213 = vrcp.f32 %v52_v32 }
 0x12f   :  { %215 = vlog2.f32 %v52_v32  ;;  %v31_v38 = vpop.xlane.xlu0 %30 }
 0x131   :  { %v60_v41 = vpop.xlane.xlu1 %59 }
 0x133   :  { %v84_v48 = vpop.permute.xlu0 %83 }
 0x135   :  { %v34_v51 = vpop.xlane.xlu1 %33 }
 0x137   :  { %v210_v34 = vpop.eup %209 }
 0x138   :  { %v212_v35 = vpop.eup %211  ;;  %v62_v36 = vmul.f32 %v210_v34, %v57_v33 }
 0x139   :  { %v66_v37 = vmul.f32 0.6931472, %v212_v35 }
 0x13b   :  { %v214_v39 = vpop.eup %213  ;;  %v69_v40 = vsub.f32 %v62_v36, %v66_v37 }
 0x13c   :  { %v216_v42 = vpop.eup %215  ;;  %v64_v43 = vmul.f32 %v214_v39, %v60_v41  ;;  %v175_v39 = vand.u32 65535, %v297_v27 }
 0x13d   :  { %v71_v44 = vmul.f32 0.48089835, %v69_v40  ;;  %v68_v45 = vmul.f32 0.6931472, %v216_v42 }
 0x13f   :  { %v70_v46 = vsub.f32 %v64_v43, %v68_v45  ;;  %v79_v47 = vmul.f32 %v200_v23, %v71_v44  ;;  %v160_v43 = vand.u32 65535, %v159_v26 }
 0x141   :  { %v72_v49 = vmul.f32 0.48089835, %v70_v46  ;;  %v81_v50 = vadd.f32 %v79_v47, %v31_v38  ;;  %v162_v44 = vcvt.s32.f32 %v160_v43 }
 0x143   :  { %v86_v52 = vadd.f32 %v84_v48, %v81_v50  ;;  %v80_v53 = vmul.f32 %v200_v23, %v72_v49 }
 0x145   :  { %v90_v54 = vmin.f32 %v86_v52, 20.0  ;;  %v82_v55 = vadd.f32 %v80_v53, %v34_v51  ;;  %vm88_vm3 = vcmp.gt.f32.partialorder %v86_v52, 20.0 }
 0x147   :  { %v92_v56 = vmul.f32 1.442695, %v90_v54  ;;  %v87_v57 = vadd.f32 %v84_v48, %v82_v55 }
 0x149   :  { %217 = vpow2.f32 %v92_v56  ;;  %v91_v58 = vmin.f32 %v87_v57, 20.0  ;;  %vm89_vm5 = vcmp.gt.f32.partialorder %v87_v57, 20.0 }
 0x14b   :  { %v94_v59 = vmul.f32 1.442695, %v91_v58 }
 0x14d   :  { %219 = vpow2.f32 %v94_v59 }
 0x156   :  { %v218_v60 = vpop.eup %217 }
 0x157   :  { %v96_v61 = vadd.f32 1.0, %v218_v60  ;;  %v99_v0 = vmul.f32 -0.5, %v218_v60  ;;  %v102_v3 = vand.u32 2147483647, %v218_v60 }
 0x159   :  { %221 = vlog2.f32 %v96_v61  ;;  %v100_v1 = vadd.f32 1.0, %v99_v0  ;;  %vm103_vm2 = vcmp.lt.f32.partialorder %v102_v3, 0.0004427343 }
 0x15a   :  { %v220_v62 = vpop.eup %219 }
 0x15b   :  { %v105_v63 = vadd.f32 1.0, %v220_v62  ;;  %v108_v2 = vmul.f32 -0.5, %v220_v62  ;;  %v101_v7 = vmul.f32 %v218_v60, %v100_v1  ;;  %v111_v10 = vand.u32 2147483647, %v220_v62 }
 0x15d   :  { %223 = vlog2.f32 %v105_v63  ;;  %v109_v9 = vadd.f32 1.0, %v108_v2  ;;  %vm112_vm4 = vcmp.lt.f32.partialorder %v111_v10, 0.0004427343 }
 0x15f   :  { %v110_v16 = vmul.f32 %v220_v62, %v109_v9 }
 0x164   :  { %v180_v25 = vpop.xlane.xlu0 %179 }
 0x165   :  { %vm181_vm7 = vcmp.eq.f32.partialorder %v300_v29, %v180_v25  ;;  %v186_v48 = vcvt.f32.s32 %v180_v25 }
 0x166   :  { %v222_v4 = vpop.eup %221 }
 0x167   :  { %v98_v6 = vmul.f32 0.6931472, %v222_v4  ;;  %v187_v49 = vshll.u32 %v186_v48, 16 }
 0x169   :  { %v104_v11 = vsel %vm103_vm2, %v101_v7, %v98_v6 }
 0x16a   :  { %v224_v12 = vpop.eup %223  ;;  %v114_v13 = vsel %vm88_vm3, %v86_v52, %v104_v11 }
 0x16b   :  { %v116_v14 = vmax.f32 %v114_v13, 1.1920929e-07  ;;  %v107_v15 = vmul.f32 0.6931472, %v224_v12 }
 0x16d   :  { %v118_v17 = vmin.f32 %v116_v14, 3.4028235e+38  ;;  %v113_v18 = vsel %vm112_vm4, %v110_v16, %v107_v15 }
 0x16e   :  { %v115_v19 = vsel %vm89_vm5, %v87_v57, %v113_v18 }
 0x16f   :  { %225 = vrcp.f32 %v118_v17  ;;  %v117_v20 = vmax.f32 %v115_v19, 1.1920929e-07 }
 0x171   :  { %v119_v21 = vmin.f32 %v117_v20, 3.4028235e+38 }
 0x173   :  { %227 = vrcp.f32 %v119_v21 }
 0x17c   :  { %v226_v22 = vpop.eup %225 }
 0x17d   :  { %126 = vperm.xlu1 %203, %v226_v22  }
 0x180   :  { %v228_v23 = vpop.eup %227 }
 0x181   :  { %131 = vperm.xlu1 %203, %v228_v23  }
 0x1a5   :  { %164 = vmin.xlane.f32.xlu1 %v163_v30 }
 0x1f8   :  { %v127_v31 = vpop.permute.xlu1 %126 }
 0x1f9   :  { %v134_v32 = vmul.f32 %v127_v31, %v272_v5  ;;  %v177_v5 = vcvt.s32.f32 %v175_v39 }
 0x1fb   :  { %v136_v33 = vmul.f32 1.442695, %v134_v32  ;;  %v182_v42 = vsel %vm181_vm7, %v177_v5, inf }
 0x1fc   :  { %v132_v34 = vpop.permute.xlu1 %131 }
 0x1fd   :  { %229 = vpow2.f32 %v136_v33  ;;  %v135_v35 = vmul.f32 %v132_v34, %v275_v8 }
 0x1ff   :  { %v138_v36 = vmul.f32 1.442695, %v135_v35 }
 0x201   :  { %231 = vpow2.f32 %v138_v36 }
 0x20a   :  { %v230_v37 = vpop.eup %229 }
 0x20b   :  { %v140_v38 = vsel %vm28_vm0, %v230_v37, 0.0 }
 0x20c   :  { %141 = vadd.xlane.f32.xlu0 %v140_v38 }
 0x20e   :  { %v232_v40 = vpop.eup %231 }
 0x20f   :  { %v143_v41 = vsel %vm28_vm0, %v232_v40, 0.0 }
 0x210   :  { %144 = vadd.xlane.f32.xlu0 %v143_v41 }
 0x214   :  { %183 = vmin.xlane.f32.xlu0 %v182_v42 }
 0x22e   :  { %v165_v8 = vpop.xlane.xlu1 %164 }
 0x22f   :  { %vm166_vm8 = vcmp.eq.f32.partialorder %v163_v30, %v165_v8  ;;  %v171_v53 = vcvt.f32.s32 %v165_v8 }
 0x230   :  { %v167_v45 = vsel %vm166_vm8, %v162_v44, inf }
 0x231   :  { %168 = vmin.xlane.f32.xlu1 %v167_v45  ;;  %v172_v55 = vshll.u32 %v171_v53, 16 }
 0x295   :  { %v142_v46 = vpop.xlane.xlu0 %141 }
 0x296   :  { %233 = vrcp.f32 %v142_v46 }
 0x299   :  { %v145_v47 = vpop.xlane.xlu0 %144 }
 0x29a   :  { %235 = vrcp.f32 %v145_v47 }
 0x29d   :  { %v184_v27 = vpop.xlane.xlu0 %183 }
 0x29e   :  { %v185_v50 = vcvt.f32.s32 %v184_v27 }
 0x2a0   :  { %v188_v51 = vadd.s32 %v187_v49, %v185_v50 }
 0x2a2   :  { %190 = vst.msk [vmem:[%s327_s4 + $0x8] sm:$0xff] %vm150_vm9, %v188_v51 }
 0x2a3   :  { %v234_v29 = vpop.eup %233 }
 0x2a4   :  { %151 = vst.msk [vmem:[%s328_s3] sm:$0xff] %vm150_vm9, %v234_v29 }
 0x2a7   :  { %v236_v52 = vpop.eup %235 }
 0x2a8   :  { %152 = vst.msk [vmem:[%s328_s3 + $0x8] sm:$0xff] %vm150_vm9, %v236_v52 }
 0x2ba   :  { %v169_v54 = vpop.xlane.xlu1 %168 }
 0x2bb   :  { %v170_v56 = vcvt.f32.s32 %v169_v54 }
 0x2bd   :  { %v173_v57 = vadd.s32 %v172_v55, %v170_v56 }
 0x2bf   :  { %189 = vst.msk [vmem:[%s327_s4] sm:$0xff] %vm150_vm9, %v173_v57 }

</bundles_post_ra>
